<compile_context>
chip_gen: v5e
topology: v5e:2x2
jax: 0.10.0
libtpu: 0.0.40
codegen_flags: <defaults>
</compile_context>

<pallas_src>
import math

import jax
import jax.numpy as jnp
from jax.experimental import pallas as pl
from jax.experimental.pallas import tpu as pltpu


def _point_product_kernel(x1_ref, x2_ref, o_ref):
    # Fused dtype promotion + elementwise multiply on the VPU.
    # x2_ref may be a (1, 1) scalar block; jnp broadcasting handles it.
    o_ref[...] = x1_ref[...].astype(o_ref.dtype) * x2_ref[...].astype(o_ref.dtype)


def _sublane_multiple(*dtypes) -> int:
    # Second-to-last block dim must align with the dtype's sublane packing:
    # 4-byte -> 8, 2-byte (bf16/f16) -> 16, 1-byte (int8/fp8) -> 32.
    m = 8
    for dt in dtypes:
        m = max(m, 32 // max(1, jnp.dtype(dt).itemsize))
    return m


def _vmem_capacity_bytes() -> int:
    cap = 64 << 20  # conservative default: v7x per-TensorCore VMEM
    try:
        info = pltpu.get_tpu_info()
        cap = int(getattr(info, "vmem_capacity_bytes", cap))
    except Exception:
        pass
    return cap


def _largest_lane_divisor(n: int, max_cols: int = 8192):
    """Largest multiple of 128 (<= max_cols) that divides n exactly, or None."""
    start = min(max_cols, (n // 128) * 128)
    for c in range(start, 0, -128):
        if n % c == 0:
            return c
    return None


def _pallas_slab(a2d, b, is_scalar, out_dtype, target_block_bytes):
    """Run the multiply kernel over a lane-dense (rows, cols) slab."""
    rows, cols = a2d.shape
    ia = jnp.dtype(a2d.dtype).itemsize
    ib = jnp.dtype(b.dtype).itemsize
    io = jnp.dtype(out_dtype).itemsize

    tiled_dtypes = (a2d.dtype, out_dtype) if is_scalar else (a2d.dtype, b.dtype, out_dtype)
    sub = _sublane_multiple(*tiled_dtypes)

    cap = _vmem_capacity_bytes()
    budget = int(0.85 * cap)
    if target_block_bytes is None:
        # ~8 MiB output blocks on 64 MiB parts (v7x), ~16 MiB on 128 MiB parts
        # (v5e/v6e). The clamp below shrinks tr if the working set won't fit.
        target_block_bytes = (16 << 20) if cap >= (100 << 20) else (8 << 20)

    # Row tile from the target output-block size, sublane-aligned.
    tr = max(1, target_block_bytes // (cols * io))
    tr = max(sub, (tr // sub) * sub)

    # Clamp the double-buffered working set (2 x (in + in + out) blocks)
    # against physical VMEM, leaving headroom.
    per_row_bytes = cols * (ia + io + (0 if is_scalar else ib))
    headroom = 4 << 20
    while tr > sub and (2 * tr * per_row_bytes + headroom) > budget:
        tr = max(sub, (tr // 2 // sub) * sub)

    if tr >= rows:
        tr = rows  # full-extent block: exempt from the sublane-multiple rule

    grid_rows = pl.cdiv(rows, tr)

    # v7x two-TensorCore balance: avoid small odd grids (2:1 core imbalance).
    if tr < rows and 1 < grid_rows <= 16 and grid_rows % 2 == 1:
        tr_even = max(sub, ((pl.cdiv(rows, grid_rows + 1) + sub - 1) // sub) * sub)
        if tr_even < rows:
            tr = tr_even
            grid_rows = pl.cdiv(rows, tr)

    vmem_limit = min(max(16 << 20, 2 * tr * per_row_bytes + headroom), budget)

    a_spec = pl.BlockSpec((tr, cols), lambda i: (i, 0))
    if is_scalar:
        b_spec = pl.BlockSpec((1, 1), lambda i: (0, 0))  # resident tiny block
    else:
        b_spec = pl.BlockSpec((tr, cols), lambda i: (i, 0))
    o_spec = pl.BlockSpec((tr, cols), lambda i: (i, 0))

    return pl.pallas_call(
        _point_product_kernel,
        out_shape=jax.ShapeDtypeStruct((rows, cols), out_dtype),
        grid=(grid_rows,),
        in_specs=[a_spec, b_spec],
        out_specs=o_spec,
        compiler_params=pltpu.CompilerParams(
            dimension_semantics=("parallel",),
            vmem_limit_bytes=int(vmem_limit),
        ),
    )(a2d, b)


def point_product(x1, x2, *, target_block_bytes=None):
    """Pointwise product x1 * x2 (same semantics as torch's `x1 * x2`)."""
    x1 = jnp.asarray(x1)
    x2 = jnp.asarray(x2)
    out_shape = jnp.broadcast_shapes(x1.shape, x2.shape)
    out_dtype = jnp.result_type(x1.dtype, x2.dtype)

    n = math.prod(out_shape)
    if n == 0:
        return jnp.zeros(out_shape, out_dtype)

    # --- Broadcasting (HBM-traffic aware) -----------------------------------
    is_scalar = False
    if x2.size == 1 and x1.size == n:
        big, small, is_scalar = x1, x2.reshape(1, 1), True
    elif x1.size == 1 and x2.size == n:
        big, small, is_scalar = x2, x1.reshape(1, 1), True
    elif x1.shape == x2.shape:
        big, small = x1, x2
    else:
        # TODO(synk): express general (non-scalar) broadcasting via BlockSpec
        # index_maps (constant block index along broadcast axes) instead of
        # materializing the expanded operand in HBM.
        big = jnp.broadcast_to(x1, out_shape)
        small = jnp.broadcast_to(x2, out_shape)

    flat_a = big.reshape(-1)
    flat_b = small if is_scalar else small.reshape(-1)

    # --- Lane-dense slab path (no padding needed) ----------------------------
    cols = _largest_lane_divisor(n)
    if cols is not None:
        rows = n // cols
        a2d = flat_a.reshape(rows, cols)
        b2d = flat_b if is_scalar else flat_b.reshape(rows, cols)
        out2d = _pallas_slab(a2d, b2d, is_scalar, out_dtype, target_block_bytes)
        return out2d.reshape(out_shape)

    # --- Awkward element counts (n not a multiple of 128) --------------------
    # Run the Pallas kernel on the 128-divisible bulk; finish the (<cols)
    # element tail with a trivial XLA multiply. No whole-array jnp.pad.
    cols = min(8192, (n // 128) * 128)
    if cols == 0:
        # Fewer than 128 elements total: not worth a kernel launch.
        other = (flat_b[0, 0] if is_scalar else flat_b).astype(out_dtype)
        return (flat_a.astype(out_dtype) * other).reshape(out_shape)

    n_bulk = (n // cols) * cols
    rows = n_bulk // cols
    bulk_a = flat_a[:n_bulk].reshape(rows, cols)
    if is_scalar:
        bulk_b = flat_b
        tail_b = flat_b[0, 0]
    else:
        bulk_b = flat_b[:n_bulk].reshape(rows, cols)
        tail_b = flat_b[n_bulk:]
    bulk_out = _pallas_slab(bulk_a, bulk_b, is_scalar, out_dtype, target_block_bytes)
    tail_out = flat_a[n_bulk:].astype(out_dtype) * tail_b.astype(out_dtype)
    return jnp.concatenate([bulk_out.reshape(-1), tail_out]).reshape(out_shape)


if __name__ == "__main__":
    key = jax.random.PRNGKey(0)
    k1, k2, k3, k4 = jax.random.split(key, 4)

    # Equal-shape NCHW inputs (main lane-dense slab path).
    x1 = jax.random.normal(k1, (2, 4, 16, 16), dtype=jnp.float32)
    x2 = jax.random.normal(k2, (2, 4, 16, 16), dtype=jnp.float32)
    out = jax.block_until_ready(point_product(x1, x2))
    ref = x1 * x2
    assert out.shape == ref.shape and out.dtype == ref.dtype
    assert jnp.allclose(out, ref, atol=1e-6, rtol=1e-6)

    # Mixed dtypes: promotion is fused into the kernel (bf16 read, f32 out).
    x1b = x1.astype(jnp.bfloat16)
    out_mixed = jax.block_until_ready(point_product(x1b, x2))
    ref_mixed = x1b * x2
    assert out_mixed.dtype == ref_mixed.dtype
    assert jnp.allclose(out_mixed, ref_mixed, atol=1e-5, rtol=1e-5)

    # Scalar broadcast: the 1-element operand stays a (1, 1) resident block.
    s = jnp.float32(2.5)
    out_s = jax.block_until_ready(point_product(x1, s))
    assert jnp.allclose(out_s, x1 * s, atol=1e-6, rtol=1e-6)

    # Awkward element count (not a multiple of 128): Pallas bulk + XLA tail.
    y1 = jax.random.normal(k3, (5, 7, 129), dtype=jnp.float32)
    y2 = jax.random.normal(k4, (5, 7, 129), dtype=jnp.float32)
    out2 = jax.block_until_ready(point_product(y1, y2))
    assert jnp.allclose(out2, y1 * y2, atol=1e-6, rtol=1e-6)

    print("KERNEL_OK")
</pallas_src>

<mosaic_0001>
module attributes {stable_mosaic.version = 11 : i64} {
  func.func @_point_product_kernel(%arg0: i32, %arg1: memref<1x2048xf32, #tpu.memory_space<vmem>>, %arg2: memref<1x2048xf32, #tpu.memory_space<vmem>>, %arg3: memref<1x2048xf32, #tpu.memory_space<vmem>>) attributes {dimension_semantics = [#tpu.dimension_semantics<parallel>], iteration_bounds = array<i64: 1>, scalar_prefetch = 0 : i64, scratch_operands = 0 : i64, tpu.core_type = #tpu.core_type<tc>, window_params = [{transform_indices = @transform_0, window_bounds = array<i64: 1, 2048>}, {transform_indices = @transform_1, window_bounds = array<i64: 1, 2048>}, {transform_indices = @transform_2, window_bounds = array<i64: 1, 2048>}]} {
    %c0 = arith.constant 0 : index
    %c0_0 = arith.constant 0 : index
    %0 = vector.load %arg1[%c0, %c0_0] : memref<1x2048xf32, #tpu.memory_space<vmem>>, vector<1x2048xf32>
    %c0_1 = arith.constant 0 : index
    %c0_2 = arith.constant 0 : index
    %1 = vector.load %arg2[%c0_1, %c0_2] : memref<1x2048xf32, #tpu.memory_space<vmem>>, vector<1x2048xf32>
    %2 = arith.mulf %0, %1 : vector<1x2048xf32>
    %c0_3 = arith.constant 0 : index
    %c0_4 = arith.constant 0 : index
    %3 = vector.load %arg3[%c0_3, %c0_4] : memref<1x2048xf32, #tpu.memory_space<vmem>>, vector<1x2048xf32>
    tpu.vector_store %arg3[%c0_3, %c0_4], %2 {strides = array<i32>} : memref<1x2048xf32, #tpu.memory_space<vmem>>, vector<1x2048xf32>,
    return
  }
  func.func @transform_0(%arg0: i32) -> (i32, i32) {
    %c0_i32 = arith.constant 0 : i32
    %c0_i32_0 = arith.constant 0 : i32
    return %arg0, %c0_i32 : i32, i32
  }
  func.func @transform_1(%arg0: i32) -> (i32, i32) {
    %c0_i32 = arith.constant 0 : i32
    %c0_i32_0 = arith.constant 0 : i32
    return %arg0, %c0_i32 : i32, i32
  }
  func.func @transform_2(%arg0: i32) -> (i32, i32) {
    %c0_i32 = arith.constant 0 : i32
    %c0_i32_0 = arith.constant 0 : i32
    return %arg0, %c0_i32 : i32, i32
  }
}

</mosaic_0001>

<bundles_post_ra>
// kernel: tpu_custom_call.1
= control target key start
LH: loop header
LB: loop body
LE: loop exit
PB: predicated region body
PF: predicated region fallthrough
CT: control target
= control target key end

     0   :  { %7 = vsyncpa [#allocation3], 0  ;;  %s174_s0 = inlined_call_operand.hbm [shape: f32[1,2048], index: 0, kind: input, shape index: {}]   ;;  %s175_s1 = inlined_call_operand.hbm [shape: f32[1,2048], index: 1, kind: input, shape index: {}]   ;;  %s176_s2 = inlined_call_operand.hbm [shape: f32[1,2048], index: 2, kind: output, shape index: {}]  }
   0x1   :  { %8 = vsyncpa [#allocation6], 0 }
   0x2   :  { %9 = vsyncpa [#allocation4], 0  ;;  %s15_s11 = sshll.u32 %s174_s0, 4  ;;  %s147_s12 = smov [#allocation2]   ;;  %s16_s11 = int_to_ptr.hbm [resolvable:$true] %s15_s11 }
   0x3   :  { %s17_s13 = sshll.u32 %s147_s12, 4  ;;  %s26_s16 = sshll.u32 %s175_s1, 4  ;;  %s18_s13 = int_to_ptr.vmem [resolvable:$true] %s17_s13  ;;  %s27_s16 = int_to_ptr.hbm [resolvable:$true] %s26_s16 }
   0x4   :  { %20 = dma.hbm_to_vmem [thread:$0]  %s16_s11, 256, %s18_s13, [#allocation3]  }
   0x5   :  { %s148_s17 = smov [#allocation5]  }
   0x6   :  { %s28_s18 = sshll.u32 %s148_s17, 4  ;;  %s29_s18 = int_to_ptr.vmem [resolvable:$true] %s28_s18 }
   0x7   :  { %31 = dma.hbm_to_vmem [thread:$0]  %s27_s16, 256, %s29_s18, [#allocation6]  }
   0x8   :  { %141 = dma.done.wait [#allocation3], 256  }
   0x9   :  { %142 = vsyncadd [#allocation3], 4294967040 }
   0xa   :  { %143 = dma.done.wait [#allocation6], 256  }
   0xb   :  { %144 = vsyncadd [#allocation6], 4294967040  ;;  %s149_s19 = smov [#allocation7]   ;;  %s55_s22 = sshll.u32 %s176_s2, 4  ;;  %v40_v0 = vld [vmem:[#allocation2] sm:$0xff]  ;;  %v42_v1 = vld [vmem:[#allocation5] sm:$0xff]  ;;  %s56_s22 = int_to_ptr.hbm [resolvable:$true] %s55_s22 }
   0xc   :  { %s53_s0 = sshll.u32 %s149_s19, 4  ;;  %v41_v2 = vld [vmem:[#allocation2 + $0x8] sm:$0xff]  ;;  %v44_v3 = vmul.f32 %v42_v1, %v40_v0  ;;  %v43_v4 = vld [vmem:[#allocation5 + $0x8] sm:$0xff]  ;;  %s54_s0 = int_to_ptr.vmem [resolvable:$true] %s53_s0 }
   0xd   :  { %v45_v5 = vmul.f32 %v43_v4, %v41_v2 }
   0xe   :  { %46 = vst [vmem:[#allocation7] sm:$0xff] %v44_v3 }
   0xf   :  { %47 = vst [vmem:[#allocation7 + $0x8] sm:$0xff] %v45_v5 }
  0x10   :  { %58 = dma.vmem_to_hbm [thread:$0]  %s54_s0, 256, %s56_s22, [#allocation4]  }
  0x11   :  { %145 = dma.done.wait [#allocation4], 256  }
  0x12   :  { %146 = vsyncadd [#allocation4], 4294967040 }
  0x13   :  { %63 = vsyncpa [#allocation3], 1 }
  0x14   :  { %64 = vsyncpa [#allocation6], 1 }
  0x15   :  { %65 = vsyncpa [#allocation4], 1 }

</bundles_post_ra>
